<compile_context>
chip_gen: v7x
topology: tpu7x:2x2x1
jax: 0.10.0
libtpu: 0.0.40
codegen_flags: <defaults>
</compile_context>

<pallas_src>
import functools

import jax
import jax.numpy as jnp
from jax.experimental import pallas as pl
from jax.experimental.pallas import tpu as pltpu


# ---------------------------------------------------------------------------
# Kernel
# ---------------------------------------------------------------------------
def _cbam_kernel(x_ref, w1t_ref, b1_ref, w2t_ref, b2_ref, cw_ref, cb_ref,
                 o_ref, *, elementwise_dtype):
    # x_ref block: [TB, C, L] in the input dtype.
    x = x_ref[...]
    if x.dtype != elementwise_dtype:
        # Only when f32 compute is forced (f32 inputs, or bf16 inputs on v5e).
        x = x.astype(elementwise_dtype)
    TB, C, L = x.shape

    # ---------------- ChannelGate ----------------
    # AdaptiveAvgPool1d(1) == mean over L; accumulate in f32.
    avg = jnp.mean(x, axis=2, dtype=jnp.float32)                      # [TB, C]
    # mlp: Linear(C -> Cr) -> ReLU -> Linear(Cr -> C), batched over TB rows.
    h = jnp.dot(avg, w1t_ref[...],
                preferred_element_type=jnp.float32) + b1_ref[...]     # [TB, Cr]
    h = jnp.maximum(h, 0.0)
    att = jnp.dot(h, w2t_ref[...],
                  preferred_element_type=jnp.float32) + b2_ref[...]   # [TB, C]
    # Reference applies the MLP to the avg-pool twice (gap2 is also an avg
    # pool), so channel_att_sum == 2 * mlp(avg).
    scale_c = jax.nn.sigmoid(2.0 * att)                               # [TB, C] f32
    # Big elementwise scaling stays in the elementwise dtype (bf16 on v6e/v7x).
    y = x * scale_c.astype(x.dtype)[:, :, None]                       # [TB, C, L]

    # ---------------- SpatialGate ----------------
    cmax = jnp.max(y, axis=1).astype(jnp.float32)                     # [TB, L]
    cmean = jnp.mean(y, axis=1, dtype=jnp.float32)                    # [TB, L]

    # Conv1d(in=2, out=1, k=7, pad=3): 7 taps via lane rolls (XLU slot, free
    # alongside the VPU work) + iota edge masks for zero padding.
    idx = jax.lax.broadcasted_iota(jnp.int32, (TB, L), 1)
    conv = jnp.zeros((TB, L), jnp.float32) + cb_ref[0, 0]
    for k in range(7):
        d = k - 3                                          # tap offset
        if d == 0:
            rmax, rmean = cmax, cmean
        else:
            s = (-d) % L                                   # rolled[i] = x[i + d]
            rmax = pltpu.roll(cmax, shift=s, axis=1)
            rmean = pltpu.roll(cmean, shift=s, axis=1)
        term = cw_ref[0, k] * rmax + cw_ref[1, k] * rmean
        if d != 0:
            valid = (idx + d >= 0) & (idx + d < L)         # zero-padding mask
            term = jnp.where(valid, term, 0.0)
        conv = conv + term
    scale_s = jax.nn.sigmoid(conv)                         # [TB, L] f32

    o_ref[...] = (y * scale_s.astype(y.dtype)[:, None, :]).astype(o_ref.dtype)


# ---------------------------------------------------------------------------
# Tiling / hardware heuristics
# ---------------------------------------------------------------------------
def _tpu_kind():
    try:
        return jax.devices()[0].device_kind.lower()
    except Exception:
        return ""


def _vmem_caps():
    """Returns (vmem_limit_bytes for the compiler, byte budget to size tiles)."""
    cap = None
    try:
        cap = int(pltpu.get_tpu_info().vmem_capacity_bytes)
    except Exception:
        cap = None
    if cap is None:
        kind = _tpu_kind()
        cap = (64 << 20) if ("v7" in kind or "7x" in kind) else (128 << 20)
    # Leave headroom for compiler-internal scratch: ~112 MiB on v5e/v6e
    # (128 MiB physical), ~48 MiB on v7x (64 MiB physical).
    vmem_limit = max(32 << 20, cap - (16 << 20))
    # Size the tiles against a further-discounted budget so double buffering
    # plus in-kernel temporaries never hit the limit.
    tile_budget = int(vmem_limit * 0.70)
    return vmem_limit, tile_budget


def _pick_tb(B, C, L, in_itemsize, cmp_itemsize, tile_budget, min_steps):
    """Batch rows per grid step.

    Constraints:
      * one input block <= ~4 MiB (diminishing DMA returns beyond ~512 rows,
        and it keeps the grid long enough to pipeline),
      * the real resident set (2x double-buffered input + 2x double-buffered
        output + in-kernel x/y temporaries + one f32-sized transient for the
        f32-accumulated reductions) fits the VMEM tile budget,
      * grid length >= min_steps when the batch allows it, so the
        prefetch/compute pipeline has a steady state (>= ~4 steps per
        TensorCore on v7x).
    """
    slab = C * L * in_itemsize                                    # one input block row
    per_row_resident = C * L * (4 * in_itemsize + 2 * cmp_itemsize + 4)
    if per_row_resident > tile_budget:
        # TODO(synk): add a two-pass (pool/scale, then tiled apply) variant for
        # shapes whose single [1, C, L] slab does not fit VMEM (hits v7x first).
        raise ValueError(
            f"CBAM single-pass kernel needs ~{per_row_resident} resident bytes "
            f"for one [1, {C}, {L}] block but only ~{tile_budget} bytes of "
            "VMEM budget are available.")

    max_tb_block = max(1, (4 << 20) // max(1, slab))
    max_tb_resident = max(1, tile_budget // per_row_resident)
    max_tb_steps = max(1, B // min_steps)
    cap = max(1, min(B, max_tb_block, max_tb_resident, max_tb_steps))

    tb = 1
    for d in range(1, cap + 1):       # largest divisor of B that fits the cap
        if B % d == 0:
            tb = d
    return tb


# ---------------------------------------------------------------------------
# Wrapper
# ---------------------------------------------------------------------------
def cbam_pallas(x, w1, b1, w2, b2, conv_w, conv_b):
    """x: [B, C, L].  Returns [B, C, L] in x.dtype."""
    B, C, L = x.shape
    Cr = w1.shape[0]

    kind = _tpu_kind()
    is_v7x = ("v7" in kind) or ("7x" in kind)
    is_v5 = "v5" in kind
    # bf16 elementwise path only on chips with bf16 VALUs (v6e/v7x); f32 else.
    if x.dtype == jnp.bfloat16 and not is_v5:
        elementwise_dtype = jnp.bfloat16
    else:
        elementwise_dtype = jnp.float32

    vmem_limit, tile_budget = _vmem_caps()
    min_steps = 8 if is_v7x else 4
    TB = _pick_tb(B, C, L,
                  jnp.dtype(x.dtype).itemsize,
                  jnp.dtype(elementwise_dtype).itemsize,
                  tile_budget, min_steps)

    # Small parameters: pre-transpose / reshape wrapper-side (negligible cost).
    w1t = jnp.asarray(w1, jnp.float32).T                    # [C, Cr]
    w2t = jnp.asarray(w2, jnp.float32).T                    # [Cr, C]
    b1_2d = jnp.asarray(b1, jnp.float32).reshape(1, Cr)
    b2_2d = jnp.asarray(b2, jnp.float32).reshape(1, C)
    cw_2d = jnp.asarray(conv_w, jnp.float32).reshape(2, 7)  # row0=max, row1=mean
    cb_2d = jnp.asarray(conv_b, jnp.float32).reshape(1, 1)

    itemsize = jnp.dtype(x.dtype).itemsize
    cost = pl.CostEstimate(
        flops=int(4 * B * C * Cr + 6 * B * C * L),
        transcendentals=int(B * (C + L)),
        bytes_accessed=int(2 * B * C * L * itemsize),
    )

    kernel = functools.partial(_cbam_kernel,
                               elementwise_dtype=elementwise_dtype)

    return pl.pallas_call(
        kernel,
        out_shape=jax.ShapeDtypeStruct((B, C, L), x.dtype),
        grid=(B // TB,),
        in_specs=[
            pl.BlockSpec((TB, C, L), lambda b: (b, 0, 0)),
            pl.BlockSpec((C, Cr), lambda b: (0, 0)),
            pl.BlockSpec((1, Cr), lambda b: (0, 0)),
            pl.BlockSpec((Cr, C), lambda b: (0, 0)),
            pl.BlockSpec((1, C), lambda b: (0, 0)),
            pl.BlockSpec(memory_space=pltpu.MemorySpace.SMEM),
            pl.BlockSpec(memory_space=pltpu.MemorySpace.SMEM),
        ],
        out_specs=pl.BlockSpec((TB, C, L), lambda b: (b, 0, 0)),
        compiler_params=pltpu.CompilerParams(
            dimension_semantics=("parallel",),
            vmem_limit_bytes=int(vmem_limit)),
        cost_estimate=cost,
    )(x, w1t, b1_2d, w2t, b2_2d, cw_2d, cb_2d)


# ---------------------------------------------------------------------------
# Pure-JAX reference mirroring the PyTorch module
# ---------------------------------------------------------------------------
def cbam_ref(x, w1, b1, w2, b2, conv_w, conv_b):
    x = x.astype(jnp.float32)
    B, C, L = x.shape
    avg = jnp.mean(x, axis=2)                              # [B, C]
    h = jax.nn.relu(avg @ w1.T + b1)                       # [B, Cr]
    att = h @ w2.T + b2                                    # [B, C]
    channel_att_sum = 2.0 * att                            # gap1 == gap2 == avg pool
    y = x * jax.nn.sigmoid(channel_att_sum)[:, :, None]    # [B, C, L]

    cmax = jnp.max(y, axis=1, keepdims=True)
    cmean = jnp.mean(y, axis=1, keepdims=True)
    pooled = jnp.concatenate([cmax, cmean], axis=1)        # [B, 2, L]
    pp = jnp.pad(pooled, ((0, 0), (0, 0), (3, 3)))
    conv = jnp.zeros((B, 1, L), jnp.float32)
    for k in range(7):
        conv = conv + jnp.einsum('bil,oi->bol', pp[:, :, k:k + L],
                                 conv_w[:, :, k])
    conv = conv + conv_b[None, :, None]
    return y * jax.nn.sigmoid(conv)


if __name__ == "__main__":
    B, C, L = 4, 32, 256
    reduction_ratio = 16
    Cr = C // reduction_ratio

    key = jax.random.PRNGKey(0)
    kx, k1, k2, k3, k4, k5, k6 = jax.random.split(key, 7)

    x = jax.random.normal(kx, (B, C, L), jnp.float32)
    # mlp: Linear(C, Cr), Linear(Cr, C)
    w1 = jax.random.normal(k1, (Cr, C), jnp.float32) * 0.1
    b1 = jax.random.normal(k2, (Cr,), jnp.float32) * 0.1
    w2 = jax.random.normal(k3, (C, Cr), jnp.float32) * 0.1
    b2 = jax.random.normal(k4, (C,), jnp.float32) * 0.1
    # spatial Conv1d(2 -> 1, kernel=7, padding=3), with bias
    conv_w = jax.random.normal(k5, (1, 2, 7), jnp.float32) * 0.1
    conv_b = jax.random.normal(k6, (1,), jnp.float32) * 0.1

    # ---- f32 path ----
    out = jax.block_until_ready(cbam_pallas(x, w1, b1, w2, b2, conv_w, conv_b))
    ref = cbam_ref(x, w1, b1, w2, b2, conv_w, conv_b)
    assert out.shape == (B, C, L)
    assert jnp.allclose(out.astype(jnp.float32), ref, atol=1e-5, rtol=1e-5), \
        f"f32 max err {jnp.max(jnp.abs(out.astype(jnp.float32) - ref))}"

    # ---- bf16 path (bf16 elementwise on v6e/v7x, f32 compute on v5e) ----
    x_bf = x.astype(jnp.bfloat16)
    out_bf = jax.block_until_ready(
        cbam_pallas(x_bf, w1, b1, w2, b2, conv_w, conv_b))
    ref_bf = cbam_ref(x_bf.astype(jnp.float32), w1, b1, w2, b2, conv_w, conv_b)
    assert out_bf.dtype == jnp.bfloat16
    assert jnp.allclose(out_bf.astype(jnp.float32), ref_bf,
                        atol=1e-1, rtol=1e-1), \
        f"bf16 max err {jnp.max(jnp.abs(out_bf.astype(jnp.float32) - ref_bf))}"

    print("KERNEL_OK")
</pallas_src>

<mosaic_0001>
module attributes {stable_mosaic.version = 11 : i64} {
  func.func @_cbam_kernel(%arg0: i32, %arg1: memref<1x32x256xf32, #tpu.memory_space<vmem>>, %arg2: memref<32x2xf32, #tpu.memory_space<vmem>>, %arg3: memref<1x2xf32, #tpu.memory_space<vmem>>, %arg4: memref<2x32xf32, #tpu.memory_space<vmem>>, %arg5: memref<1x32xf32, #tpu.memory_space<vmem>>, %arg6: memref<2x7xf32, #tpu.memory_space<smem>>, %arg7: memref<1x1xf32, #tpu.memory_space<smem>>, %arg8: memref<1x32x256xf32, #tpu.memory_space<vmem>>) attributes {dimension_semantics = [#tpu.dimension_semantics<parallel>], iteration_bounds = array<i64: 4>, scalar_prefetch = 0 : i64, scratch_operands = 0 : i64, tpu.core_type = #tpu.core_type<tc>, window_params = [{transform_indices = @transform_0, window_bounds = array<i64: 1, 32, 256>}, {pipeline_mode = #tpu.pipeline_mode<synchronous>, transform_indices = @transform_1, window_bounds = array<i64: 32, 2>}, {pipeline_mode = #tpu.pipeline_mode<synchronous>, transform_indices = @transform_2, window_bounds = array<i64: 1, 2>}, {pipeline_mode = #tpu.pipeline_mode<synchronous>, transform_indices = @transform_3, window_bounds = array<i64: 2, 32>}, {pipeline_mode = #tpu.pipeline_mode<synchronous>, transform_indices = @transform_4, window_bounds = array<i64: 1, 32>}, {transform_indices = @transform_5, window_bounds = array<i64: 2, 7>}, {transform_indices = @transform_6, window_bounds = array<i64: 1, 1>}, {transform_indices = @transform_7, window_bounds = array<i64: 1, 32, 256>}]} {
    %c0 = arith.constant 0 : index
    %c0_0 = arith.constant 0 : index
    %c0_1 = arith.constant 0 : index
    %0 = vector.load %arg1[%c0, %c0_0, %c0_1] : memref<1x32x256xf32, #tpu.memory_space<vmem>>, vector<1x32x256xf32>
    %cst = arith.constant dense<0.000000e+00> : vector<1x32xf32>
    %1 = vector.multi_reduction <add>, %0, %cst [2] : vector<1x32x256xf32> to vector<1x32xf32>
    %cst_2 = arith.constant 2.560000e+02 : f32
    %2 = vector.broadcast %cst_2 : f32 to vector<1x32xf32>
    %3 = arith.divf %1, %2 : vector<1x32xf32>
    %c0_3 = arith.constant 0 : index
    %c0_4 = arith.constant 0 : index
    %4 = vector.load %arg2[%c0_3, %c0_4] : memref<32x2xf32, #tpu.memory_space<vmem>>, vector<32x2xf32>
    %cst_5 = arith.constant dense<0.000000e+00> : vector<1x2xf32>
    %5 = tpu.matmul %3, %4, %cst_5 {dimension_numbers = #tpu.dot_dimension_numbers<[1], [0], [0], [1], [0, 0, 1, 1], [], []>} : vector<1x32xf32>, vector<32x2xf32>, vector<1x2xf32> -> vector<1x2xf32>
    %c0_6 = arith.constant 0 : index
    %c0_7 = arith.constant 0 : index
    %6 = vector.load %arg3[%c0_6, %c0_7] : memref<1x2xf32, #tpu.memory_space<vmem>>, vector<1x2xf32>
    %7 = arith.addf %5, %6 : vector<1x2xf32>
    %cst_8 = arith.constant 0.000000e+00 : f32
    %8 = vector.broadcast %cst_8 : f32 to vector<1x2xf32>
    %9 = arith.maximumf %7, %8 : vector<1x2xf32>
    %c0_9 = arith.constant 0 : index
    %c0_10 = arith.constant 0 : index
    %10 = vector.load %arg4[%c0_9, %c0_10] : memref<2x32xf32, #tpu.memory_space<vmem>>, vector<2x32xf32>
    %cst_11 = arith.constant dense<0.000000e+00> : vector<1x32xf32>
    %11 = tpu.matmul %9, %10, %cst_11 {dimension_numbers = #tpu.dot_dimension_numbers<[1], [0], [0], [1], [0, 0, 1, 1], [], []>} : vector<1x2xf32>, vector<2x32xf32>, vector<1x32xf32> -> vector<1x32xf32>
    %c0_12 = arith.constant 0 : index
    %c0_13 = arith.constant 0 : index
    %12 = vector.load %arg5[%c0_12, %c0_13] : memref<1x32xf32, #tpu.memory_space<vmem>>, vector<1x32xf32>
    %13 = arith.addf %11, %12 : vector<1x32xf32>
    %cst_14 = arith.constant 2.000000e+00 : f32
    %14 = vector.broadcast %cst_14 : f32 to vector<1x32xf32>
    %15 = arith.mulf %14, %13 : vector<1x32xf32>
    %16 = arith.negf %15 : vector<1x32xf32>
    %17 = math.exp %16 : vector<1x32xf32>
    %cst_15 = arith.constant 1.000000e+00 : f32
    %18 = vector.broadcast %cst_15 : f32 to vector<1x32xf32>
    %19 = arith.addf %18, %17 : vector<1x32xf32>
    %20 = arith.divf %18, %19 : vector<1x32xf32>
    %21 = vector.shape_cast %20 : vector<1x32xf32> to vector<1x32x1xf32>
    %22 = vector.broadcast %21 : vector<1x32x1xf32> to vector<1x32x256xf32>
    %23 = arith.mulf %0, %22 : vector<1x32x256xf32>
    %cst_16 = arith.constant dense<0xFF800000> : vector<1x256xf32>
    %24 = vector.multi_reduction <maximumf>, %23, %cst_16 [1] : vector<1x32x256xf32> to vector<1x256xf32>
    %cst_17 = arith.constant dense<0.000000e+00> : vector<1x256xf32>
    %25 = vector.multi_reduction <add>, %23, %cst_17 [1] : vector<1x32x256xf32> to vector<1x256xf32>
    %cst_18 = arith.constant 3.200000e+01 : f32
    %26 = vector.broadcast %cst_18 : f32 to vector<1x256xf32>
    %27 = arith.divf %25, %26 : vector<1x256xf32>
    %28 = tpu.iota {dimensions = array<i32: 1>} : vector<1x256xi32>
    %cst_19 = arith.constant 0.000000e+00 : f32
    %29 = vector.broadcast %cst_19 : f32 to vector<1x256xf32>
    %c0_20 = arith.constant 0 : index
    %c0_21 = arith.constant 0 : index
    %30 = memref.load %arg7[%c0_20, %c0_21] : memref<1x1xf32, #tpu.memory_space<smem>>
    %31 = vector.broadcast %30 : f32 to vector<1x256xf32>
    %32 = arith.addf %29, %31 : vector<1x256xf32>
    %c3_i32 = arith.constant 3 : i32
    %33 = tpu.dynamic_rotate %24 by %c3_i32 dim 1 : vector<1x256xf32>, i32 -> vector<1x256xf32>
    %c3_i32_22 = arith.constant 3 : i32
    %34 = tpu.dynamic_rotate %27 by %c3_i32_22 dim 1 : vector<1x256xf32>, i32 -> vector<1x256xf32>
    %c0_23 = arith.constant 0 : index
    %c0_24 = arith.constant 0 : index
    %35 = memref.load %arg6[%c0_23, %c0_24] : memref<2x7xf32, #tpu.memory_space<smem>>
    %36 = vector.broadcast %35 : f32 to vector<1x256xf32>
    %37 = arith.mulf %36, %33 : vector<1x256xf32>
    %c1 = arith.constant 1 : index
    %c0_25 = arith.constant 0 : index
    %38 = memref.load %arg6[%c1, %c0_25] : memref<2x7xf32, #tpu.memory_space<smem>>
    %39 = vector.broadcast %38 : f32 to vector<1x256xf32>
    %40 = arith.mulf %39, %34 : vector<1x256xf32>
    %41 = arith.addf %37, %40 : vector<1x256xf32>
    %c-3_i32 = arith.constant -3 : i32
    %42 = vector.broadcast %c-3_i32 : i32 to vector<1x256xi32>
    %43 = arith.addi %28, %42 : vector<1x256xi32>
    %c0_i32 = arith.constant 0 : i32
    %44 = vector.broadcast %c0_i32 : i32 to vector<1x256xi32>
    %45 = arith.cmpi sge, %43, %44 : vector<1x256xi32>
    %c-3_i32_26 = arith.constant -3 : i32
    %46 = vector.broadcast %c-3_i32_26 : i32 to vector<1x256xi32>
    %47 = arith.addi %28, %46 : vector<1x256xi32>
    %c256_i32 = arith.constant 256 : i32
    %48 = vector.broadcast %c256_i32 : i32 to vector<1x256xi32>
    %49 = arith.cmpi slt, %47, %48 : vector<1x256xi32>
    %50 = arith.andi %45, %49 : vector<1x256xi1>
    %cst_27 = arith.constant 0.000000e+00 : f32
    %51 = vector.broadcast %cst_27 : f32 to vector<1x256xf32>
    %52 = arith.select %50, %41, %51 : vector<1x256xi1>, vector<1x256xf32>
    %53 = arith.addf %32, %52 : vector<1x256xf32>
    %c2_i32 = arith.constant 2 : i32
    %54 = tpu.dynamic_rotate %24 by %c2_i32 dim 1 : vector<1x256xf32>, i32 -> vector<1x256xf32>
    %c2_i32_28 = arith.constant 2 : i32
    %55 = tpu.dynamic_rotate %27 by %c2_i32_28 dim 1 : vector<1x256xf32>, i32 -> vector<1x256xf32>
    %c0_29 = arith.constant 0 : index
    %c1_30 = arith.constant 1 : index
    %56 = memref.load %arg6[%c0_29, %c1_30] : memref<2x7xf32, #tpu.memory_space<smem>>
    %57 = vector.broadcast %56 : f32 to vector<1x256xf32>
    %58 = arith.mulf %57, %54 : vector<1x256xf32>
    %c1_31 = arith.constant 1 : index
    %c1_32 = arith.constant 1 : index
    %59 = memref.load %arg6[%c1_31, %c1_32] : memref<2x7xf32, #tpu.memory_space<smem>>
    %60 = vector.broadcast %59 : f32 to vector<1x256xf32>
    %61 = arith.mulf %60, %55 : vector<1x256xf32>
    %62 = arith.addf %58, %61 : vector<1x256xf32>
    %c-2_i32 = arith.constant -2 : i32
    %63 = vector.broadcast %c-2_i32 : i32 to vector<1x256xi32>
    %64 = arith.addi %28, %63 : vector<1x256xi32>
    %c0_i32_33 = arith.constant 0 : i32
    %65 = vector.broadcast %c0_i32_33 : i32 to vector<1x256xi32>
    %66 = arith.cmpi sge, %64, %65 : vector<1x256xi32>
    %c-2_i32_34 = arith.constant -2 : i32
    %67 = vector.broadcast %c-2_i32_34 : i32 to vector<1x256xi32>
    %68 = arith.addi %28, %67 : vector<1x256xi32>
    %c256_i32_35 = arith.constant 256 : i32
    %69 = vector.broadcast %c256_i32_35 : i32 to vector<1x256xi32>
    %70 = arith.cmpi slt, %68, %69 : vector<1x256xi32>
    %71 = arith.andi %66, %70 : vector<1x256xi1>
    %cst_36 = arith.constant 0.000000e+00 : f32
    %72 = vector.broadcast %cst_36 : f32 to vector<1x256xf32>
    %73 = arith.select %71, %62, %72 : vector<1x256xi1>, vector<1x256xf32>
    %74 = arith.addf %53, %73 : vector<1x256xf32>
    %c1_i32 = arith.constant 1 : i32
    %75 = tpu.dynamic_rotate %24 by %c1_i32 dim 1 : vector<1x256xf32>, i32 -> vector<1x256xf32>
    %c1_i32_37 = arith.constant 1 : i32
    %76 = tpu.dynamic_rotate %27 by %c1_i32_37 dim 1 : vector<1x256xf32>, i32 -> vector<1x256xf32>
    %c0_38 = arith.constant 0 : index
    %c2 = arith.constant 2 : index
    %77 = memref.load %arg6[%c0_38, %c2] : memref<2x7xf32, #tpu.memory_space<smem>>
    %78 = vector.broadcast %77 : f32 to vector<1x256xf32>
    %79 = arith.mulf %78, %75 : vector<1x256xf32>
    %c1_39 = arith.constant 1 : index
    %c2_40 = arith.constant 2 : index
    %80 = memref.load %arg6[%c1_39, %c2_40] : memref<2x7xf32, #tpu.memory_space<smem>>
    %81 = vector.broadcast %80 : f32 to vector<1x256xf32>
    %82 = arith.mulf %81, %76 : vector<1x256xf32>
    %83 = arith.addf %79, %82 : vector<1x256xf32>
    %c-1_i32 = arith.constant -1 : i32
    %84 = vector.broadcast %c-1_i32 : i32 to vector<1x256xi32>
    %85 = arith.addi %28, %84 : vector<1x256xi32>
    %c0_i32_41 = arith.constant 0 : i32
    %86 = vector.broadcast %c0_i32_41 : i32 to vector<1x256xi32>
    %87 = arith.cmpi sge, %85, %86 : vector<1x256xi32>
    %c-1_i32_42 = arith.constant -1 : i32
    %88 = vector.broadcast %c-1_i32_42 : i32 to vector<1x256xi32>
    %89 = arith.addi %28, %88 : vector<1x256xi32>
    %c256_i32_43 = arith.constant 256 : i32
    %90 = vector.broadcast %c256_i32_43 : i32 to vector<1x256xi32>
    %91 = arith.cmpi slt, %89, %90 : vector<1x256xi32>
    %92 = arith.andi %87, %91 : vector<1x256xi1>
    %cst_44 = arith.constant 0.000000e+00 : f32
    %93 = vector.broadcast %cst_44 : f32 to vector<1x256xf32>
    %94 = arith.select %92, %83, %93 : vector<1x256xi1>, vector<1x256xf32>
    %95 = arith.addf %74, %94 : vector<1x256xf32>
    %c0_45 = arith.constant 0 : index
    %c3 = arith.constant 3 : index
    %96 = memref.load %arg6[%c0_45, %c3] : memref<2x7xf32, #tpu.memory_space<smem>>
    %97 = vector.broadcast %96 : f32 to vector<1x256xf32>
    %98 = arith.mulf %97, %24 : vector<1x256xf32>
    %c1_46 = arith.constant 1 : index
    %c3_47 = arith.constant 3 : index
    %99 = memref.load %arg6[%c1_46, %c3_47] : memref<2x7xf32, #tpu.memory_space<smem>>
    %100 = vector.broadcast %99 : f32 to vector<1x256xf32>
    %101 = arith.mulf %100, %27 : vector<1x256xf32>
    %102 = arith.addf %98, %101 : vector<1x256xf32>
    %103 = arith.addf %95, %102 : vector<1x256xf32>
    %c255_i32 = arith.constant 255 : i32
    %104 = tpu.dynamic_rotate %24 by %c255_i32 dim 1 : vector<1x256xf32>, i32 -> vector<1x256xf32>
    %c255_i32_48 = arith.constant 255 : i32
    %105 = tpu.dynamic_rotate %27 by %c255_i32_48 dim 1 : vector<1x256xf32>, i32 -> vector<1x256xf32>
    %c0_49 = arith.constant 0 : index
    %c4 = arith.constant 4 : index
    %106 = memref.load %arg6[%c0_49, %c4] : memref<2x7xf32, #tpu.memory_space<smem>>
    %107 = vector.broadcast %106 : f32 to vector<1x256xf32>
    %108 = arith.mulf %107, %104 : vector<1x256xf32>
    %c1_50 = arith.constant 1 : index
    %c4_51 = arith.constant 4 : index
    %109 = memref.load %arg6[%c1_50, %c4_51] : memref<2x7xf32, #tpu.memory_space<smem>>
    %110 = vector.broadcast %109 : f32 to vector<1x256xf32>
    %111 = arith.mulf %110, %105 : vector<1x256xf32>
    %112 = arith.addf %108, %111 : vector<1x256xf32>
    %c1_i32_52 = arith.constant 1 : i32
    %113 = vector.broadcast %c1_i32_52 : i32 to vector<1x256xi32>
    %114 = arith.addi %28, %113 : vector<1x256xi32>
    %c0_i32_53 = arith.constant 0 : i32
    %115 = vector.broadcast %c0_i32_53 : i32 to vector<1x256xi32>
    %116 = arith.cmpi sge, %114, %115 : vector<1x256xi32>
    %c1_i32_54 = arith.constant 1 : i32
    %117 = vector.broadcast %c1_i32_54 : i32 to vector<1x256xi32>
    %118 = arith.addi %28, %117 : vector<1x256xi32>
    %c256_i32_55 = arith.constant 256 : i32
    %119 = vector.broadcast %c256_i32_55 : i32 to vector<1x256xi32>
    %120 = arith.cmpi slt, %118, %119 : vector<1x256xi32>
    %121 = arith.andi %116, %120 : vector<1x256xi1>
    %cst_56 = arith.constant 0.000000e+00 : f32
    %122 = vector.broadcast %cst_56 : f32 to vector<1x256xf32>
    %123 = arith.select %121, %112, %122 : vector<1x256xi1>, vector<1x256xf32>
    %124 = arith.addf %103, %123 : vector<1x256xf32>
    %c254_i32 = arith.constant 254 : i32
    %125 = tpu.dynamic_rotate %24 by %c254_i32 dim 1 : vector<1x256xf32>, i32 -> vector<1x256xf32>
    %c254_i32_57 = arith.constant 254 : i32
    %126 = tpu.dynamic_rotate %27 by %c254_i32_57 dim 1 : vector<1x256xf32>, i32 -> vector<1x256xf32>
    %c0_58 = arith.constant 0 : index
    %c5 = arith.constant 5 : index
    %127 = memref.load %arg6[%c0_58, %c5] : memref<2x7xf32, #tpu.memory_space<smem>>
    %128 = vector.broadcast %127 : f32 to vector<1x256xf32>
    %129 = arith.mulf %128, %125 : vector<1x256xf32>
    %c1_59 = arith.constant 1 : index
    %c5_60 = arith.constant 5 : index
    %130 = memref.load %arg6[%c1_59, %c5_60] : memref<2x7xf32, #tpu.memory_space<smem>>
    %131 = vector.broadcast %130 : f32 to vector<1x256xf32>
    %132 = arith.mulf %131, %126 : vector<1x256xf32>
    %133 = arith.addf %129, %132 : vector<1x256xf32>
    %c2_i32_61 = arith.constant 2 : i32
    %134 = vector.broadcast %c2_i32_61 : i32 to vector<1x256xi32>
    %135 = arith.addi %28, %134 : vector<1x256xi32>
    %c0_i32_62 = arith.constant 0 : i32
    %136 = vector.broadcast %c0_i32_62 : i32 to vector<1x256xi32>
    %137 = arith.cmpi sge, %135, %136 : vector<1x256xi32>
    %c2_i32_63 = arith.constant 2 : i32
    %138 = vector.broadcast %c2_i32_63 : i32 to vector<1x256xi32>
    %139 = arith.addi %28, %138 : vector<1x256xi32>
    %c256_i32_64 = arith.constant 256 : i32
    %140 = vector.broadcast %c256_i32_64 : i32 to vector<1x256xi32>
    %141 = arith.cmpi slt, %139, %140 : vector<1x256xi32>
    %142 = arith.andi %137, %141 : vector<1x256xi1>
    %cst_65 = arith.constant 0.000000e+00 : f32
    %143 = vector.broadcast %cst_65 : f32 to vector<1x256xf32>
    %144 = arith.select %142, %133, %143 : vector<1x256xi1>, vector<1x256xf32>
    %145 = arith.addf %124, %144 : vector<1x256xf32>
    %c253_i32 = arith.constant 253 : i32
    %146 = tpu.dynamic_rotate %24 by %c253_i32 dim 1 : vector<1x256xf32>, i32 -> vector<1x256xf32>
    %c253_i32_66 = arith.constant 253 : i32
    %147 = tpu.dynamic_rotate %27 by %c253_i32_66 dim 1 : vector<1x256xf32>, i32 -> vector<1x256xf32>
    %c0_67 = arith.constant 0 : index
    %c6 = arith.constant 6 : index
    %148 = memref.load %arg6[%c0_67, %c6] : memref<2x7xf32, #tpu.memory_space<smem>>
    %149 = vector.broadcast %148 : f32 to vector<1x256xf32>
    %150 = arith.mulf %149, %146 : vector<1x256xf32>
    %c1_68 = arith.constant 1 : index
    %c6_69 = arith.constant 6 : index
    %151 = memref.load %arg6[%c1_68, %c6_69] : memref<2x7xf32, #tpu.memory_space<smem>>
    %152 = vector.broadcast %151 : f32 to vector<1x256xf32>
    %153 = arith.mulf %152, %147 : vector<1x256xf32>
    %154 = arith.addf %150, %153 : vector<1x256xf32>
    %c3_i32_70 = arith.constant 3 : i32
    %155 = vector.broadcast %c3_i32_70 : i32 to vector<1x256xi32>
    %156 = arith.addi %28, %155 : vector<1x256xi32>
    %c0_i32_71 = arith.constant 0 : i32
    %157 = vector.broadcast %c0_i32_71 : i32 to vector<1x256xi32>
    %158 = arith.cmpi sge, %156, %157 : vector<1x256xi32>
    %c3_i32_72 = arith.constant 3 : i32
    %159 = vector.broadcast %c3_i32_72 : i32 to vector<1x256xi32>
    %160 = arith.addi %28, %159 : vector<1x256xi32>
    %c256_i32_73 = arith.constant 256 : i32
    %161 = vector.broadcast %c256_i32_73 : i32 to vector<1x256xi32>
    %162 = arith.cmpi slt, %160, %161 : vector<1x256xi32>
    %163 = arith.andi %158, %162 : vector<1x256xi1>
    %cst_74 = arith.constant 0.000000e+00 : f32
    %164 = vector.broadcast %cst_74 : f32 to vector<1x256xf32>
    %165 = arith.select %163, %154, %164 : vector<1x256xi1>, vector<1x256xf32>
    %166 = arith.addf %145, %165 : vector<1x256xf32>
    %167 = arith.negf %166 : vector<1x256xf32>
    %168 = math.exp %167 : vector<1x256xf32>
    %cst_75 = arith.constant 1.000000e+00 : f32
    %169 = vector.broadcast %cst_75 : f32 to vector<1x256xf32>
    %170 = arith.addf %169, %168 : vector<1x256xf32>
    %171 = arith.divf %169, %170 : vector<1x256xf32>
    %172 = vector.shape_cast %171 : vector<1x256xf32> to vector<1x1x256xf32>
    %173 = vector.broadcast %172 : vector<1x1x256xf32> to vector<1x32x256xf32>
    %174 = arith.mulf %23, %173 : vector<1x32x256xf32>
    %c0_76 = arith.constant 0 : index
    %c0_77 = arith.constant 0 : index
    %c0_78 = arith.constant 0 : index
    %175 = vector.load %arg8[%c0_76, %c0_77, %c0_78] : memref<1x32x256xf32, #tpu.memory_space<vmem>>, vector<1x32x256xf32>
    tpu.vector_store %arg8[%c0_76, %c0_77, %c0_78], %174 {strides = array<i32>} : memref<1x32x256xf32, #tpu.memory_space<vmem>>, vector<1x32x256xf32>,
    return
  }
  func.func @transform_0(%arg0: i32) -> (i32, i32, i32) {
    %c0_i32 = arith.constant 0 : i32
    %c0_i32_0 = arith.constant 0 : i32
    %c0_i32_1 = arith.constant 0 : i32
    return %arg0, %c0_i32, %c0_i32_0 : i32, i32, i32
  }
  func.func @transform_1(%arg0: i32) -> (i32, i32) {
    %c0_i32 = arith.constant 0 : i32
    %c0_i32_0 = arith.constant 0 : i32
    %c0_i32_1 = arith.constant 0 : i32
    return %c0_i32, %c0_i32_0 : i32, i32
  }
  func.func @transform_2(%arg0: i32) -> (i32, i32) {
    %c0_i32 = arith.constant 0 : i32
    %c0_i32_0 = arith.constant 0 : i32
    %c0_i32_1 = arith.constant 0 : i32
    return %c0_i32, %c0_i32_0 : i32, i32
  }
  func.func @transform_3(%arg0: i32) -> (i32, i32) {
    %c0_i32 = arith.constant 0 : i32
    %c0_i32_0 = arith.constant 0 : i32
    %c0_i32_1 = arith.constant 0 : i32
    return %c0_i32, %c0_i32_0 : i32, i32
  }
  func.func @transform_4(%arg0: i32) -> (i32, i32) {
    %c0_i32 = arith.constant 0 : i32
    %c0_i32_0 = arith.constant 0 : i32
    %c0_i32_1 = arith.constant 0 : i32
    return %c0_i32, %c0_i32_0 : i32, i32
  }
  func.func @transform_5(%arg0: i32) -> (i32, i32) {
    %c0_i32 = arith.constant 0 : i32
    %c0_i32_0 = arith.constant 0 : i32
    %c0_i32_1 = arith.constant 0 : i32
    return %c0_i32, %c0_i32_0 : i32, i32
  }
  func.func @transform_6(%arg0: i32) -> (i32, i32) {
    %c0_i32 = arith.constant 0 : i32
    %c0_i32_0 = arith.constant 0 : i32
    %c0_i32_1 = arith.constant 0 : i32
    return %c0_i32, %c0_i32_0 : i32, i32
  }
  func.func @transform_7(%arg0: i32) -> (i32, i32, i32) {
    %c0_i32 = arith.constant 0 : i32
    %c0_i32_0 = arith.constant 0 : i32
    %c0_i32_1 = arith.constant 0 : i32
    return %arg0, %c0_i32, %c0_i32_0 : i32, i32, i32
  }
}

</mosaic_0001>

<bundles_post_ra>
// kernel: tpu_custom_call.1
= control target key start
LH: loop header
LB: loop body
LE: loop exit
PB: predicated region body
PF: predicated region fallthrough
CT: control target
= control target key end

     0   :  { %s2084_s0 = inlined_call_operand.hbm [shape: f32[4,32,256], index: 0, kind: input, shape index: {}]   ;;  %s2085_s1 = inlined_call_operand.hbm [shape: f32[32,2], index: 1, kind: input, shape index: {}]   ;;  %s2086_s2 = inlined_call_operand.hbm [shape: f32[1,2], index: 2, kind: input, shape index: {}]   ;;  %s2087_s3 = inlined_call_operand.hbm [shape: f32[2,32], index: 3, kind: input, shape index: {}]   ;;  %s2088_s4 = inlined_call_operand.hbm [shape: f32[1,32], index: 4, kind: input, shape index: {}]   ;;  %s2089_s5 = inlined_call_operand.hbm [shape: f32[2,7], index: 5, kind: input, shape index: {}]   ;;  %s2090_s6 = inlined_call_operand.<no memory space> [shape: f32[1,1], index: 6, kind: input, shape index: {}]   ;;  %s2091_s7 = inlined_call_operand.hbm [shape: f32[4,32,256], index: 7, kind: output, shape index: {}]  }
   0x1   :  { %12 = sst [smem:[#allocation2]] %s2090_s6 }
   0x2   :  { %13 = vsyncpa [#allocation4], 0 }
   0x3   :  { %15 = vsyncpa [#allocation4 + $0x1], 0 }
   0x4   :  { %16 = vsyncpa [#allocation8], 0 }
   0x5   :  { %17 = vsyncpa [#allocation11], 0 }
   0x6   :  { %18 = vsyncpa [#allocation6], 0 }
   0x7   :  { %19 = vsyncpa [#allocation5], 0 }
   0x8   :  { %21 = vsyncpa [#allocation5 + $0x1], 0  ;;  %s1547_s26 = smov 0   ;;  %s1549_s27 = smov 0  }
   0x9   :  { %s1551_s28 = smov 0   ;;  %s1553_s29 = smov 0  }
   0xa LB: > { %s1482_s6 = smov [#allocation7]   ;;  %s1568_s8 = sadd.s32 4294967295, %s1480_s29   ;;  %s1480_s29 = sphi %s1553_s29, %s2115_s29   ;;  %s1476_s28 = sphi %s1551_s28, %s2114_s28   ;;  %s1472_s27 = sphi %s1549_s27, %s2113_s27   ;;  %s1468_s26 = sphi %s1547_s26, %s2112_s26  }
   0xb   : > { %s222_s30 = sshll.u32 %s1482_s6, 4  ;;  %p1050_p0 = scmp.ge.s32.totalorder %s1480_s29, 1  ;;  %s1573_s30 = int_to_ptr.vmem [resolvable:$true] %s222_s30 }
   0xc   : > { %p2092_p1 = scmp.eq.s32.totalorder %s1568_s8, 0  ;;  %p210_p2 = scmp.lt.s32.totalorder %s1480_s29, 5 }
   0xd   : > { %s1483_s10 = smov [#allocation10]   ;;  %s1484_s13 = smov [#allocation9]  }
   0xe   : > { %p1575_p3 = pnand %p1050_p0, %p210_p2  ;;  %s247_s11 = sshll.u32 %s1483_s10, 4  ;;  %s1587_s11 = int_to_ptr.vmem [resolvable:$true] %s247_s11 }
   0xf   : > { %s236_s14 = sshll.u32 %s1484_s13, 4  ;;  %s1247_s17 = scalar_lea.hbm %s2085_s1, 512  ;;  %s1589_s14 = int_to_ptr.vmem [resolvable:$true] %s236_s14 }
  0x10   : > { %s2095_s9 = scalar_select %p1575_p3, 1, 0 }
  0x11   : > { %p1147_p4 = pneg %p1575_p3  ;;  %p1248_p6 = scmp.ne.s32.totalorder %s2085_s1, %s1247_s17 }
  0x12   : > { %p1254_p10 = scmp.lt.u32.totalorder %s1247_s17, %s2085_s1 }
  0x13   : > { %p1583_p5 = pnand %p1147_p4, %p2092_p1 }
  0x15   : > { %p1599_p7 = pneg %p1583_p5 }
  0x17   : > { %p1250_p8 = pnand %p1599_p7, %p1248_p6 }
  0x19   : > { %p1251_p9 = pneg %p1250_p8 }
  0x1b   : > { %p1256_p11 = pnand %p1254_p10, %p1251_p9 }
  0x1d   : > { %1259 = shalt.err (!%p1256_p11)
}
  0x1e   : > { %s1260_s23 = scalar_lea.vmem %s1573_s30, 512  ;;  %p1268_p2 = scmp.lt.s32.totalorder %s1573_s30, %s1573_s30 }
  0x1f   : > { %p1261_p12 = scmp.ne.s32.totalorder %s1573_s30, %s1260_s23  ;;  %p1269_p4 = scmp.lt.s32.totalorder %s1260_s23, %s1260_s23 }
  0x21   : > { %p1263_p13 = pnand %p1261_p12, %p1599_p7  ;;  %p1270_p6 = por %p1269_p4, %p1268_p2 }
  0x23   : > { %p1264_p0 = pneg %p1263_p13 }
  0x25   : > { %p1271_p8 = pnand %p1270_p6, %p1264_p0 }
  0x27   : > { %1274 = shalt.err (!%p1271_p8)
}
  0x28   : > { %s1485_s24 = smov 128   ;;  %s1486_s25 = smov 8  }
  0x29   : > { %1150 = dma.hbm_to_vmem [thread:$0]  (!%p1583_p5), %s2085_s1, 512, %s1573_s30, [#allocation8], %s1485_s24, %s1485_s24, %s1486_s25  }
  0x2a   : > { %s1275_s16 = scalar_lea.hbm %s2087_s3, 32 }
  0x2b   : > { %p1276_p9 = scmp.ne.s32.totalorder %s2087_s3, %s1275_s16  ;;  %p1282_p12 = scmp.lt.u32.totalorder %s1275_s16, %s2087_s3 }
  0x2d   : > { %p1278_p10 = pnand %p1276_p9, %p1599_p7 }
  0x2f   : > { %p1279_p11 = pneg %p1278_p10 }
  0x31   : > { %p1284_p13 = pnand %p1282_p12, %p1279_p11 }
  0x33   : > { %1287 = shalt.err (!%p1284_p13)
}
  0x34   : > { %s1288_s30 = scalar_lea.vmem %s1587_s11, 32  ;;  %p1296_p6 = scmp.lt.s32.totalorder %s1587_s11, %s1587_s11 }
  0x35   : > { %p1289_p0 = scmp.ne.s32.totalorder %s1587_s11, %s1288_s30  ;;  %p1297_p8 = scmp.lt.s32.totalorder %s1288_s30, %s1288_s30 }
  0x37   : > { %p1291_p2 = pnand %p1289_p0, %p1599_p7  ;;  %p1298_p9 = por %p1297_p8, %p1296_p6 }
  0x39   : > { %p1292_p4 = pneg %p1291_p2 }
  0x3b   : > { %p1299_p10 = pnand %p1298_p9, %p1292_p4 }
  0x3d   : > { %1302 = shalt.err (!%p1299_p10)
}
  0x3e   : > { %1156 = dma.hbm_to_vmem [thread:$0]  (!%p1583_p5), %s2087_s3, 32, %s1587_s11, [#allocation11]  }
  0x3f   : > { %s1303_s6 = scalar_lea.hbm %s2086_s2, 16 }
  0x40   : > { %p1304_p11 = scmp.ne.s32.totalorder %s2086_s2, %s1303_s6  ;;  %p1310_p0 = scmp.lt.u32.totalorder %s1303_s6, %s2086_s2 }
  0x42   : > { %p1306_p12 = pnand %p1304_p11, %p1599_p7 }
  0x44   : > { %p1307_p13 = pneg %p1306_p12 }
  0x46   : > { %p1312_p2 = pnand %p1310_p0, %p1307_p13 }
  0x48   : > { %1315 = shalt.err (!%p1312_p2)
}
  0x49   : > { %s1316_s11 = scalar_lea.vmem %s1589_s14, 16  ;;  %s1323_s17 = scalar_lea.vmem %s1589_s14, 32 }
  0x4a   : > { %p1317_p4 = scmp.ne.s32.totalorder %s1589_s14, %s1316_s11  ;;  %p1324_p9 = scmp.lt.s32.totalorder %s1589_s14, %s1589_s14 }
  0x4b   : > { %p1325_p10 = scmp.lt.s32.totalorder %s1323_s17, %s1316_s11 }
  0x4c   : > { %p1319_p6 = pnand %p1317_p4, %p1599_p7 }
  0x4d   : > { %p1326_p11 = por %p1325_p10, %p1324_p9 }
  0x4e   : > { %p1320_p8 = pneg %p1319_p6 }
  0x50   : > { %p1327_p12 = pnand %p1326_p11, %p1320_p8 }
  0x52   : > { %1330 = shalt.err (!%p1327_p12)
}
  0x53   : > { %1153 = dma.hbm_to_vmem [thread:$0]  (!%p1583_p5), %s2086_s2, 16, %s1589_s14, [#allocation8]  }
  0x54   : > { %s1487_s21 = smov [#allocation12]   ;;  %s1331_s24 = scalar_lea.hbm %s2088_s4, 16 }
  0x55   : > { %s258_s30 = sshll.u32 %s1487_s21, 4  ;;  %p1332_p13 = scmp.ne.s32.totalorder %s2088_s4, %s1331_s24  ;;  %s259_s30 = int_to_ptr.vmem [resolvable:$true] %s258_s30 }
  0x56   : > { %p1338_p4 = scmp.lt.u32.totalorder %s1331_s24, %s2088_s4 }
  0x57   : > { %p1334_p0 = pnand %p1332_p13, %p1599_p7 }
  0x59   : > { %p1335_p2 = pneg %p1334_p0 }
  0x5b   : > { %p1340_p6 = pnand %p1338_p4, %p1335_p2 }
  0x5d   : > { %1343 = shalt.err (!%p1340_p6)
}
  0x5e   : > { %s1344_s14 = scalar_lea.vmem %s259_s30, 16  ;;  %s1351_s15 = scalar_lea.vmem %s259_s30, 32 }
  0x5f   : > { %p1345_p8 = scmp.ne.s32.totalorder %s259_s30, %s1344_s14  ;;  %p1352_p11 = scmp.lt.s32.totalorder %s259_s30, %s259_s30 }
  0x60   : > { %p1353_p12 = scmp.lt.s32.totalorder %s1351_s15, %s1344_s14 }
  0x61   : > { %p1347_p9 = pnand %p1345_p8, %p1599_p7 }
  0x62   : > { %p1354_p1 = por %p1353_p12, %p1352_p11 }
  0x63   : > { %p1348_p10 = pneg %p1347_p9 }
  0x65   : > { %p1355_p3 = pnand %p1354_p1, %p1348_p10 }
  0x67   : > { %1358 = shalt.err (!%p1355_p3)
}
  0x68   : > { %1159 = dma.hbm_to_vmem [thread:$0]  (!%p1583_p5), %s2088_s4, 16, %s259_s30, [#allocation11]  }
  0x69   : > { %s1359_s19 = scalar_lea.hbm %s2089_s5, 32 }
  0x6a   : > { %p1360_p13 = scmp.ne.s32.totalorder %s2089_s5, %s1359_s19  ;;  %p1366_p1 = scmp.lt.u32.totalorder %s1359_s19, %s2089_s5 }
  0x6c   : > { %p1362_p0 = pnand %p1360_p13, %p1599_p7 }
  0x6e   : > { %p1363_p2 = pneg %p1362_p0 }
  0x70   : > { %p1368_p3 = pnand %p1366_p1, %p1363_p2 }
  0x72   : > { %1371 = shalt.err (!%p1368_p3)
}
  0x73   : > { %s1488_s25 = smov [#allocation13]   ;;  %s1049_s20 = sadd.s32 4294967294, %s1480_s29  }
  0x74   : > { %1162 = dma.hbm_to_smem (!%p1583_p5), %s2089_s5, 32, %s1488_s25, [#allocation6]  }
  0x75   : > { %s1703_s12 = sadd.s32 1, %s1480_s29   ;;  %s34_s10 = sadd.s32 1, %s1476_s28 }
  0x76   : > { %s31_s13 = ssub.s32 %s1480_s29, %s1703_s12  ;;  %p41_p7 = scmp.ne.s32.totalorder %s1476_s28, %s1472_s27 }
  0x77   : > { %p32_p4 = scmp.eq.s32.totalorder %s31_s13, 0  ;;  %p42_p6 = scmp.eq.s32.totalorder %s1480_s29, 0 }
  0x78   : > { %p47_p8 = scmp.ne.s32.totalorder %s1472_s27, %s1468_s26  ;;  %p197_p9 = scmp.eq.s32.totalorder %s1568_s8, 3 }
  0x79   : > { %s1715_s14 = scalar_select %p32_p4, %s1476_s28, %s34_s10  }
  0x7a   : > { %p43_p10 = por %p42_p6, %p41_p7  ;;  %p2098_p11 = scmp.eq.s32.totalorder %s1568_s8, 0 }
  0x7b   : > { %p1723_p5 = por %p197_p9, %p41_p7  ;;  %p203_p13 = scmp.eq.s32.totalorder %s1049_s20, 3 }
  0x7c   : > { %p1719_p12 = por %p2098_p11, %p47_p8  ;;  %p1176_p0 = scmp.lt.s32.totalorder %s1480_s29, 4 }
  0x7d   : > { %s2100_s16 = scalar_select %p1723_p5, 1, 0 }
  0x7e   : > { %s281_s11 = sand.u32 1, %s1476_s28   ;;  %p1729_p2 = por %p203_p13, %p47_p8 }
  0x7f   : > { %s1057_s18 = sshll.u32 %s281_s11, 6  ;;  %s1092_s19 = sshll.u32 %s1480_s29, 10 }
  0x80   : > { %s2101_s17 = scalar_select %p1729_p2, 1, 0 }
  0x81   : > { %s1737_s23 = scalar_lea.hbm %s2084_s0, %s1092_s19  ;;  %s285_s24 = scalar_lea.vmem [#allocation3], %s1057_s18 }
  0x82   : > { %s292_s25 = sshll.u32 %s285_s24, 4  ;;  %p1739_p1 = pnand %p1176_p0, %p43_p10  ;;  %s1743_s25 = int_to_ptr.vmem [resolvable:$true] %s292_s25 }
  0x83   : > { %s1745_s6 = scalar_lea.sflag [#allocation4], %s281_s11  ;;  %s1372_s20 = scalar_lea.hbm %s1737_s23, 1024 }
  0x84   : > { %p1373_p3 = scmp.ne.s32.totalorder %s1737_s23, %s1372_s20  ;;  %p1374_p7 = pneg %p1739_p1 }
  0x85   : > { %s1377_s18 = scalar_lea.hbm %s2084_s0, 4096  ;;  %p1378_p8 = scmp.lt.u32.totalorder %s1737_s23, %s2084_s0 }
  0x86   : > { %p1375_p4 = pnand %p1374_p7, %p1373_p3  ;;  %p1379_p9 = scmp.lt.u32.totalorder %s1377_s18, %s1372_s20 }
  0x87   : > { %p1381_p11 = scmp.lt.u32.totalorder %s1372_s20, %s1737_s23 }
  0x88   : > { %p1376_p6 = pneg %p1375_p4  ;;  %p1380_p10 = por %p1379_p9, %p1378_p8 }
  0x8a   : > { %p1382_p13 = por %p1381_p11, %p1380_p10 }
  0x8c   : > { %p1383_p0 = pnand %p1382_p13, %p1376_p6 }
  0x8e   : > { %1386 = shalt.err (!%p1383_p0)
}
  0x8f   : > { %s1387_s11 = scalar_lea.vmem %s1743_s25, 1024  ;;  %s1489_s22 = smov [#allocation3]  }
  0x90   : > { %p1388_p3 = scmp.ne.s32.totalorder %s1743_s25, %s1387_s11  ;;  %s1392_s24 = sshll.u32 %s1489_s22, 4  ;;  %s1393_s24 = int_to_ptr.vmem [resolvable:$false] %s1392_s24 }
  0x91   : > { %s1394_s10 = scalar_lea.vmem %s1393_s24, 2048  ;;  %p1395_p5 = scmp.lt.s32.totalorder %s1743_s25, %s1393_s24 }
  0x92   : > { %p1390_p4 = pnand %p1388_p3, %p1374_p7  ;;  %p1396_p8 = scmp.lt.s32.totalorder %s1394_s10, %s1387_s11 }
  0x94   : > { %p1391_p2 = pneg %p1390_p4  ;;  %p1397_p9 = por %p1396_p8, %p1395_p5 }
  0x96   : > { %p1398_p10 = pnand %p1397_p9, %p1391_p2 }
  0x98   : > { %1401 = shalt.err (!%p1398_p10)
}
  0x99   : > { %s1490_s20 = smov 256   ;;  %s1491_s13 = smov 16  }
  0x9a   : > { %1166 = dma.hbm_to_vmem [thread:$0]  (!%p1739_p1), %s1737_s23, 1024, %s1743_s25, %s1745_s6, %s1490_s20, %s1490_s20, %s1491_s13  }
  0x9b   : > { %p2103_p7 = scmp.ne.s32.totalorder %s2095_s9, 0 }
  0x9c   : > { %s1776_s18 = sand.u32 (!%p2103_p7), 1, %s1472_s27  }
  0x9d   : > { %304 = sbr.rel (%p2103_p7) target bundleno = 1149 (0x47d), region = 48  ;;  %s1061_s19 = sshll.u32 (!%p2103_p7), %s1776_s18, 6 }
  0x9e   : > { %s307_s21 = scalar_lea.sflag (!%p2103_p7), [#allocation4], %s1776_s18  ;;  %s310_s11 = scalar_lea.vmem (!%p2103_p7), [#allocation3], %s1061_s19 }
  0xa4   : > { %1447 = dma.done.wait (%p1719_p12), %s307_s21, 1024  }
  0xa5   : > { %1449 = vsyncadd (%p1719_p12), %s307_s21, 4294966272  ;;  %p2104_p5 = scmp.eq.s32.totalorder %s1568_s8, 0 }
  0xa7   : > { %1451 = dma.done.wait (%p2104_p5), [#allocation8], 528   ;;  %p2105_p2 = pmov %p2104_p5 }
  0xa9   : > { %1453 = vsyncadd (%p2105_p2), [#allocation8], 4294966768  ;;  %p2106_p1 = pmov %p2105_p2 }
  0xab   : > { %1455 = dma.done.wait (%p2106_p1), [#allocation11], 48   ;;  %p2107_p6 = pmov %p2106_p1 }
  0xac   : > { %p2108_p11 = pmov %p2106_p1 }
  0xad   : > { %1457 = vsyncadd (%p2107_p6), [#allocation11], 4294967248 }
  0xae   : > { %1459 = dma.done.wait (%p2108_p11), [#allocation6], 32   ;;  %p2109_p13 = pmov %p2106_p1 }
  0xb0   : > { %1461 = vsyncadd (%p2109_p13), [#allocation6], 4294967264 }
  0xb1   : > { %335 = sfence }
  0xb2   : > { %v1798_v0 = vld [vmem:[%s310_s11] sm:$0xff]  ;;  %v1800_v1 = vld [vmem:[%s310_s11 + $0x8] sm:$0xff]  ;;  %v1808_v5 = vld [vmem:[%s310_s11 + $0x10] sm:$0xff]  ;;  %v1492_v15 = vmov 0.0|0.0   ;;  %vm1493_vm0 = vmmov 0   ;;  %v1494_v19 = vmov 0.0   ;;  %v396_v20 = vlaneseq }
  0xb3   : > { %v1802_v2 = vld [vmem:[%s310_s11 + $0x20] sm:$0xff]  ;;  %v370_v3 = vadd.f32 %v1800_v1, %v1798_v0  ;;  %v1806_v4 = vld [vmem:[%s310_s11 + $0x28] sm:$0xff]  ;;  %v1810_v6 = vld [vmem:[%s310_s11 + $0x18] sm:$0xff]  ;;  %1117 = vmatprep.subr.bf16.mxu0 %v1492_v15  ;;  %1109 = vmatprep.mubr.msk.f32.mxu0 %vm1493_vm0, %v1494_v19  ;;  %vm407_vm1 = vcmask 130112   ;;  %vm414_vm2 = vcmask 195712   ;;  %vm421_vm3 = vcmask 261312  }
  0xb4   : > { %v376_v7 = vadd.f32 %v1806_v4, %v1802_v2  ;;  %v1814_v8 = vld [vmem:[%s310_s11 + $0x30] sm:$0xff]  ;;  %v1816_v9 = vld [vmem:[%s310_s11 + $0x38] sm:$0xff]  ;;  %v373_v10 = vadd.f32 %v1810_v6, %v1808_v5  ;;  %v387_v12 = vld [vmem:[#allocation7] sm:$0xff]  ;;  %1112 = vmatprep.subr.mxu1 %v1494_v19  ;;  %1114 = vmatprep.mubr.msk.f32.mxu1 %vm1493_vm0, %v1494_v19  ;;  %v1822_v21 = vand.u32 127, %v396_v20  ;;  %v399_v22 = vshrl.u32 %v396_v20, 7  ;;  %s1077_s9 = sld [smem:[#allocation13 + $0x3]] }
  0xb5   : > { %371 = vadd.xlane.f32.xlu0 %v370_v3  ;;  %v379_v11 = vadd.f32 %v1816_v9, %v1814_v8  ;;  %v388_v13 = vld [vmem:[#allocation7 + $0x8] sm:$0xff]  ;;  %v389_v16 = vld [vmem:[#allocation7 + $0x10] sm:$0xff]  ;;  %v390_v17 = vld [vmem:[#allocation7 + $0x18] sm:$0xff]  ;;  %vm423_vm4 = vcmask 261120   ;;  %vm503_vm5 = vcmask 1041408   ;;  %vm499_vm6 = vcmask 15360  }
  0xb6   : > { %377 = vadd.xlane.f32.xlu1 %v376_v7  ;;  %v1118_v14 = vpack.c.bf16 %v388_v13, %v387_v12  ;;  %v1121_v18 = vpack.c.bf16 %v390_v17, %v389_v16  ;;  %v402_v23 = vadd.s32 4294967288, %v1822_v21  ;;  %v409_v25 = vadd.s32 4294967280, %v1822_v21  ;;  %v497_v45 = vld [vmem:[#allocation10] sm:$0x3]  ;;  %v391_v46 = vld [vmem:[#allocation9] sm:$0x1] }
  0xb7   : > { %v416_v26 = vadd.s32 4294967272, %v1822_v21  ;;  %v400_v28 = vsub.s32 %v1822_v21, %v399_v22  ;;  %1113 = vmatpush3.msk.msra.mxu1 %vm503_vm5, %v497_v45  ;;  %v498_v51 = vld [vmem:[#allocation12] sm:$0x1]  ;;  %v1828_v59 = vsub.s32 0, %v399_v22  ;;  %s1078_s15 = sld [smem:[#allocation13 + $0x83]]  ;;  %s1495_s23 = smov 3  }
  0xb8   : > { %1119 = vmatpush3.bf16.msra.mxu0 %v1118_v14  ;;  %v405_v30 = vsub.s32 %v402_v23, %v399_v22  ;;  %v412_v31 = vsub.s32 %v409_v25, %v399_v22  ;;  %s1496_s25 = smov 2   ;;  %s1497_s30 = smov 1   ;;  %vm658_vm7 = vcmp.lt.s32.totalorder %v1822_v21, 3  ;;  %vm693_vm8 = vcmp.lt.s32.totalorder %v1822_v21, 2 }
  0xb9   : > { %374 = vadd.xlane.f32.xlu0 %v373_v10  ;;  %1120 = vmatprep.subr.bf16.mxu0 %v1492_v15  ;;  %v419_v34 = vsub.s32 %v416_v26, %v399_v22  ;;  %s1498_s6 = smov 127   ;;  %s1499_s22 = smov 126   ;;  %vm728_vm9 = vcmp.lt.s32.totalorder %v1822_v21, 1  ;;  %vm775_vm10 = vcmp.lt.s32.totalorder %v1822_v21, 127  ;;  %vm810_vm12 = vcmp.lt.s32.totalorder %v1822_v21, 126 }
  0xba   : > { %380 = vadd.xlane.f32.xlu1 %v379_v11  ;;  %v760_v45 = vstv %s1077_s9  ;;  %s1500_s24 = smov 125   ;;  %s1883_s10 = sld [smem:[#allocation13]]  ;;  %vm845_vm15 = vcmp.lt.s32.totalorder %v1822_v21, 125 }
  0xbb   : > { %s1885_s20 = sld [smem:[#allocation13 + $0x1]]  ;;  %s1887_s13 = sld [smem:[#allocation13 + $0x2]] }
  0xbc   : > { %1122 = vmatpush3.bf16.msra.mxu0 %v1121_v18  ;;  %s1889_s21 = sld [smem:[#allocation13 + $0x80]]  ;;  %s1891_s11 = sld [smem:[#allocation13 + $0x4]] }
  0xbd   : > { %s1895_s9 = sld [smem:[#allocation13 + $0x5]]  ;;  %p2110_p0 = scmp.ne.s32.totalorder %s2100_s16, 0 }
 0x142   : > { %v372_v24 = vpop.xlane.xlu0 %371 }
 0x143   : > { %v378_v27 = vpop.xlane.xlu1 %377  ;;  %v383_v29 = vmul.f32 0.00390625, %v372_v24 }
 0x144   : > { %v385_v32 = vmul.f32 0.00390625, %v378_v27 }
 0x145   : > { %v401_v38 = vrot.slane %v383_v29, %v400_v28 }
 0x146   : > { %v375_v33 = vpop.xlane.xlu0 %374  ;;  %v413_v40 = vrot.slane %v385_v32, %v412_v31 }
 0x147   : > { %v384_v35 = vmul.f32 0.00390625, %v375_v33  ;;  %v381_v36 = vpop.xlane.xlu1 %380 }
 0x148   : > { %v386_v37 = vmul.f32 0.00390625, %v381_v36 }
 0x149   : > { %v406_v39 = vrot.slane %v384_v35, %v405_v30 }
 0x14a   : > { %v420_v41 = vrot.slane %v386_v37, %v419_v34 }
 0x14b   : > { %v408_v42 = vsel %vm407_vm1, %v406_v39, %v401_v38 }
 0x14c   : > { %v415_v43 = vsel %vm414_vm2, %v413_v40, %v408_v42 }
 0x14d   : > { %v422_v44 = vsel %vm421_vm3, %v420_v41, %v415_v43 }
 0x14e   : > { %1110 = vmatmul.mubr.msk.f32.vlgmr.msra.gmra.mrb[0].mxu0 %vm423_vm4, %v422_v44 }
 0x221   : > { %v492_v47 = vpop.f32.mrb[0].mxu0 }
 0x222   : > { %v493_v48 = vadd.f32 %v492_v47, %v391_v46  ;;  %v1111_v49 = vpop.f32.mrb[1].mxu0  ;;  %v764_v46 = vstv %s1078_s15  ;;  %s1899_s15 = sld [smem:[#allocation13 + $0x6]] }
 0x224   : > { %v496_v50 = vmax.f32 %v493_v48, 0.0 }
 0x226   : > { %1115 = vmatmul.mubr.msk.f32.vlgmr.msra.gmra.mrb[0].mxu1 %vm499_vm6, %v496_v50 }
 0x2f9   : > { %v573_v52 = vpop.f32.mrb[0].mxu1 }
 0x2fa   : > { %v574_v53 = vadd.f32 %v573_v52, %v498_v51  ;;  %v1116_v54 = vpop.f32.mrb[1].mxu1 }
 0x2fc   : > { %v1071_v55 = vmul.f32 -2.0, %v574_v53 }
 0x2fe   : > { %v579_v56 = vmul.f32 1.442695, %v1071_v55 }
 0x300   : > { %1235 = vpow2.f32 %v579_v56 }
 0x30a   : > { %v1236_v57 = vpop.eup %1235 }
 0x30b   : > { %v581_v58 = vadd.f32 1.0, %v1236_v57 }
 0x30d   : > { %1237 = vrcp.f32 %v581_v58 }
 0x317   : > { %v1238_v60 = vpop.eup %1237 }
 0x318   : > { %v587_v61 = vrot.slane %v1238_v60, %v1828_v59 }
 0x31a   : > { %593 = vbcast.lane.b32.xlu1 %v587_v61, 264  ;;  %589 = vbcast.lane.b32.xlu0 %v587_v61, 256 }
 0x31e   : > { %597 = vbcast.lane.b32.xlu1 %v587_v61, 272 }
 0x322   : > { %601 = vbcast.lane.b32.xlu1 %v587_v61, 280 }
 0x38c   : > { %v594_v62 = vpop.permute.xlu1 %593  ;;  %v590_v63 = vpop.permute.xlu0 %589 }
 0x38d   : > { %v1832_v3 = vmul.f32 %v594_v62, %v1808_v5  ;;  %v1835_v7 = vmul.f32 %v594_v62, %v1810_v6  ;;  %v1838_v10 = vmul.f32 %v590_v63, %v1798_v0  ;;  %v1841_v11 = vmul.f32 %v590_v63, %v1800_v1 }
 0x38f   : > { %v629_v5 = vadd.f32 %v1832_v3, %v1838_v10  ;;  %v638_v6 = vadd.f32 %v1835_v7, %v1841_v11 }
 0x390   : > { %v598_v12 = vpop.permute.xlu1 %597 }
 0x391   : > { %v1844_v13 = vmul.f32 %v598_v12, %v1802_v2  ;;  %v1847_v14 = vmul.f32 %v598_v12, %v1806_v4 }
 0x393   : > { %v630_v0 = vadd.f32 %v629_v5, %v1844_v13  ;;  %v639_v16 = vadd.f32 %v638_v6, %v1847_v14  ;;  %v611_v4 = vmax.f32 %v1838_v10, %v1844_v13  ;;  %v620_v17 = vmax.f32 %v1841_v11, %v1847_v14 }
 0x394   : > { %v602_v15 = vpop.permute.xlu1 %601 }
 0x395   : > { %v1856_v1 = vmul.f32 %v602_v15, %v1814_v8  ;;  %v1859_v2 = vmul.f32 %v602_v15, %v1816_v9 }
 0x397   : > { %v612_v18 = vmax.f32 %v1832_v3, %v1856_v1  ;;  %v621_v19 = vmax.f32 %v1835_v7, %v1859_v2  ;;  %v631_v20 = vadd.f32 %v630_v0, %v1856_v1  ;;  %v640_v8 = vadd.f32 %v639_v16, %v1859_v2 }
 0x399   : > { %v613_v22 = vmax.f32 %v611_v4, %v612_v18  ;;  %v622_v23 = vmax.f32 %v620_v17, %v621_v19  ;;  %v632_v9 = vrot.slane %v631_v20, 4  ;;  %v641_v24 = vrot.slane %v640_v8, 4 }
 0x39a   : > { %v677_v4 = vadd.s32 4294967293, %v1822_v21  ;;  %v668_v17 = vstv %s1883_s10  ;;  %v703_v18 = vstv %s1885_s20  ;;  %s1093_s10 = sshll.u32 %s1568_s8, 10  ;;  %s361_s20 = scalar_lea.vmem [#allocation14], %s1061_s19 }
 0x39b   : > { %v614_v25 = vrot.slane %v613_v22, 4  ;;  %v623_v26 = vrot.slane %v622_v23, 4  ;;  %v633_v27 = vadd.f32 %v632_v9, %v631_v20  ;;  %v642_v28 = vadd.f32 %v641_v24, %v640_v8  ;;  %s2035_s8 = scalar_lea.hbm %s2091_s7, %s1093_s10  ;;  %s913_s19 = scalar_lea.sflag [#allocation5], %s1776_s18 }
 0x39c   : > { %v738_v20 = vstv %s1887_s13  ;;  %v672_v8 = vstv %s1889_s21  ;;  %v820_v9 = vstv %s1895_s9  ;;  %vm679_vm11 = vcmp.ge.s32.totalorder %v677_v4, 0  ;;  %s926_s13 = sshll.u32 %s361_s20, 4  ;;  %s2037_s13 = int_to_ptr.vmem [resolvable:$true] %s926_s13 }
 0x39d   : > { %v615_v29 = vmax.f32 %v613_v22, %v614_v25  ;;  %v624_v30 = vmax.f32 %v622_v23, %v623_v26  ;;  %v634_v31 = vrot.slane %v633_v27, 2  ;;  %v643_v32 = vrot.slane %v642_v28, 2  ;;  %s1402_s9 = scalar_lea.vmem %s2037_s13, 1024 }
 0x39e   : > { %v712_v22 = vadd.s32 4294967294, %v1822_v21  ;;  %v785_v23 = vstv %s1891_s11  ;;  %v1928_v26 = vadd.s32 4294967295, %v1822_v21  ;;  %p1403_p12 = scmp.ne.s32.totalorder %s2037_s13, %s1402_s9 }
 0x39f   : > { %v616_v33 = vrot.slane %v615_v29, 2  ;;  %v625_v34 = vrot.slane %v624_v30, 2  ;;  %v635_v35 = vadd.f32 %v634_v31, %v633_v27  ;;  %v644_v36 = vadd.f32 %v643_v32, %v642_v28 }
 0x3a0   : > { %v855_v27 = vstv %s1899_s15  ;;  %vm714_vm13 = vcmp.ge.s32.totalorder %v712_v22, 0  ;;  %vm749_vm14 = vcmp.ge.s32.totalorder %v1928_v26, 0  ;;  %p1404_p3 = pnand %p1403_p12, %p2110_p0  ;;  %s1501_s15 = smov [#allocation14]  }
 0x3a1   : > { %v617_v37 = vmax.f32 %v615_v29, %v616_v33  ;;  %v626_v38 = vmax.f32 %v624_v30, %v625_v34  ;;  %v636_v39 = vrot.slane %v635_v35, 1  ;;  %v645_v40 = vrot.slane %v644_v36, 1 }
 0x3a2   : > { %p1405_p4 = pneg %p1404_p3 }
 0x3a3   : > { %v618_v41 = vrot.slane %v617_v37, 1  ;;  %v627_v42 = vrot.slane %v626_v38, 1  ;;  %v637_v43 = vadd.f32 %v636_v39, %v635_v35  ;;  %v646_v44 = vadd.f32 %v645_v40, %v644_v36 }
 0x3a5   : > { %v619_v47 = vmax.f32 %v617_v37, %v618_v41  ;;  %v628_v48 = vmax.f32 %v626_v38, %v627_v42  ;;  %v648_v49 = vmul.f32 0.03125, %v637_v43  ;;  %v649_v50 = vmul.f32 0.03125, %v646_v44 }
 0x3a7   : > { %656 = vrot.lane.b32.xlu1 %v628_v48, %s1495_s23  ;;  %654 = vrot.lane.b32.xlu0 %v619_v47, %s1495_s23  ;;  %v762_v51 = vmul.f32 %v760_v45, %v628_v48  ;;  %v766_v52 = vmul.f32 %v764_v46, %v649_v50  ;;  %v765_v53 = vmul.f32 %v764_v46, %v648_v49 }
 0x3a8   : > { %v761_v54 = vmul.f32 %v760_v45, %v619_v47 }
 0x3a9   : > { %v1871_v55 = vadd.f32 %v766_v52, %v762_v51 }
 0x3aa   : > { %v1873_v56 = vadd.f32 %v765_v53, %v761_v54 }
 0x3ab   : > { %691 = vrot.lane.b32.xlu1 %v628_v48, %s1496_s25  ;;  %689 = vrot.lane.b32.xlu0 %v619_v47, %s1496_s25 }
 0x3af   : > { %726 = vrot.lane.b32.xlu1 %v628_v48, %s1497_s30  ;;  %724 = vrot.lane.b32.xlu0 %v619_v47, %s1497_s30 }
 0x3b3   : > { %773 = vrot.lane.b32.xlu1 %v628_v48, %s1498_s6  ;;  %771 = vrot.lane.b32.xlu0 %v619_v47, %s1498_s6 }
 0x3b7   : > { %808 = vrot.lane.b32.xlu1 %v628_v48, %s1499_s22  ;;  %806 = vrot.lane.b32.xlu0 %v619_v47, %s1499_s22 }
 0x3bb   : > { %843 = vrot.lane.b32.xlu1 %v628_v48, %s1500_s24  ;;  %841 = vrot.lane.b32.xlu0 %v619_v47, %s1500_s24 }
 0x3bf   : > { %663 = vrot.lane.b32.xlu1 %v649_v50, %s1495_s23  ;;  %661 = vrot.lane.b32.xlu0 %v648_v49, %s1495_s23  ;;  %s1901_s23 = sld [smem:[#allocation2]] }
 0x3c3   : > { %698 = vrot.lane.b32.xlu1 %v649_v50, %s1496_s25  ;;  %696 = vrot.lane.b32.xlu0 %v648_v49, %s1496_s25  ;;  %s1903_s25 = sld [smem:[#allocation13 + $0x81]] }
 0x3c5   : > { %v652_v32 = vstv %s1901_s23  ;;  %s1406_s23 = sshll.u32 %s1501_s15, 4  ;;  %s1407_s23 = int_to_ptr.vmem [resolvable:$false] %s1406_s23 }
 0x3c6   : > { %p1409_p8 = scmp.lt.s32.totalorder %s2037_s13, %s1407_s23 }
 0x3c7   : > { %733 = vrot.lane.b32.xlu1 %v649_v50, %s1497_s30  ;;  %731 = vrot.lane.b32.xlu0 %v648_v49, %s1497_s30  ;;  %s1910_s30 = sld [smem:[#allocation13 + $0x82]] }
 0x3c9   : > { %v707_v36 = vstv %s1903_s25  ;;  %s1408_s25 = scalar_lea.vmem %s1407_s23, 2048 }
 0x3ca   : > { %p1410_p9 = scmp.lt.s32.totalorder %s1408_s25, %s1402_s9 }
 0x3cb   : > { %780 = vrot.lane.b32.xlu1 %v649_v50, %s1498_s6  ;;  %778 = vrot.lane.b32.xlu0 %v648_v49, %s1498_s6  ;;  %s1922_s6 = sld [smem:[#allocation13 + $0x84]] }
 0x3cc   : > { %p1411_p10 = por %p1410_p9, %p1409_p8 }
 0x3cd   : > { %v742_v41 = vstv %s1910_s30 }
 0x3ce   : > { %p1412_p7 = pnand %p1411_p10, %p1405_p4 }
 0x3cf   : > { %815 = vrot.lane.b32.xlu1 %v649_v50, %s1499_s22  ;;  %813 = vrot.lane.b32.xlu0 %v648_v49, %s1499_s22  ;;  %s1961_s22 = sld [smem:[#allocation13 + $0x85]] }
 0x3d1   : > { %v789_v53 = vstv %s1922_s6 }
 0x3d3   : > { %850 = vrot.lane.b32.xlu1 %v649_v50, %s1500_s24  ;;  %848 = vrot.lane.b32.xlu0 %v648_v49, %s1500_s24  ;;  %v650_v49 = vadd.s32 128, %v1822_v21  ;;  %s1977_s24 = sld [smem:[#allocation13 + $0x86]] }
 0x419   : > { %v657_v57 = vpop.permute.xlu1 %656  ;;  %v655_v58 = vpop.permute.xlu0 %654 }
 0x41a   : > { %v660_v19 = vsel %vm658_vm7, %v657_v57, %v655_v58  ;;  %v659_v30 = vsel %vm658_vm7, %v655_v58, %v657_v57 }
 0x41b   : > { %v669_v31 = vmul.f32 %v668_v17, %v660_v19  ;;  %v670_v42 = vmul.f32 %v668_v17, %v659_v30  ;;  %v795_v30 = vadd.s32 1, %v650_v49 }
 0x41d   : > { %v692_v60 = vpop.permute.xlu1 %691  ;;  %v690_v61 = vpop.permute.xlu0 %689  ;;  %vm799_vm0 = vcmp.lt.s32.totalorder %v795_v30, 256 }
 0x41e   : > { %v695_v34 = vsel %vm693_vm8, %v692_v60, %v690_v61  ;;  %v694_v37 = vsel %vm693_vm8, %v690_v61, %v692_v60 }
 0x41f   : > { %v704_v46 = vmul.f32 %v703_v18, %v695_v34  ;;  %v705_v50 = vmul.f32 %v703_v18, %v694_v37 }
 0x421   : > { %v1875_v62 = vpop.permute.xlu1 %726  ;;  %v1877_v63 = vpop.permute.xlu0 %724 }
 0x422   : > { %v730_v43 = vsel %vm728_vm9, %v1875_v62, %v1877_v63  ;;  %v729_v51 = vsel %vm728_vm9, %v1877_v63, %v1875_v62 }
 0x423   : > { %v739_v54 = vmul.f32 %v738_v20, %v730_v43 }
 0x425   : > { %v1879_v12 = vpop.permute.xlu1 %773  ;;  %v1881_v5 = vpop.permute.xlu0 %771 }
 0x426   : > { %v776_v57 = vsel %vm775_vm10, %v1881_v5, %v1879_v12  ;;  %v777_v62 = vsel %vm775_vm10, %v1879_v12, %v1881_v5 }
 0x427   : > { %v787_v12 = vmul.f32 %v785_v23, %v777_v62 }
 0x429   : > { %v1893_v6 = vpop.permute.xlu1 %808  ;;  %v1897_v15 = vpop.permute.xlu0 %806 }
 0x42d   : > { %v1906_v0 = vpop.permute.xlu1 %843  ;;  %v1908_v16 = vpop.permute.xlu0 %841 }
 0x431   : > { %v664_v24 = vpop.permute.xlu1 %663  ;;  %v662_v25 = vpop.permute.xlu0 %661 }
 0x432   : > { %v665_v28 = vsel %vm658_vm7, %v662_v25, %v664_v24  ;;  %v666_v29 = vsel %vm658_vm7, %v664_v24, %v662_v25 }
 0x433   : > { %v673_v33 = vmul.f32 %v672_v8, %v666_v29  ;;  %v674_v35 = vmul.f32 %v672_v8, %v665_v28  ;;  %v740_v8 = vmul.f32 %v738_v20, %v729_v51 }
 0x435   : > { %v675_v38 = vadd.f32 %v673_v33, %v669_v31  ;;  %v699_v39 = vpop.permute.xlu1 %698  ;;  %v697_v40 = vpop.permute.xlu0 %696  ;;  %v676_v52 = vadd.f32 %v674_v35, %v670_v42  ;;  %v830_v31 = vadd.s32 2, %v650_v49  ;;  %v786_v33 = vmul.f32 %v785_v23, %v776_v57 }
 0x436   : > { %v700_v44 = vsel %vm693_vm8, %v697_v40, %v699_v39  ;;  %v701_v45 = vsel %vm693_vm8, %v699_v39, %v697_v40 }
 0x437   : > { %v708_v47 = vmul.f32 %v707_v36, %v701_v45  ;;  %v709_v48 = vmul.f32 %v707_v36, %v700_v44  ;;  %v685_v58 = vsel %vm679_vm11, %v675_v38, 0.0  ;;  %v688_v29 = vadd.f32 %v676_v52, %v652_v32 }
 0x438   : > { %v687_v28 = vadd.f32 %v685_v58, %v652_v32  ;;  %v811_v32 = vsel %vm810_vm12, %v1897_v15, %v1893_v6  ;;  %v824_v44 = vstv %s1961_s22  ;;  %vm834_vm1 = vcmp.lt.s32.totalorder %v830_v31, 256 }
 0x439   : > { %v710_v60 = vadd.f32 %v708_v47, %v704_v46  ;;  %v734_v61 = vpop.permute.xlu1 %733  ;;  %v732_v17 = vpop.permute.xlu0 %731  ;;  %v711_v63 = vadd.f32 %v709_v48, %v705_v50  ;;  %v821_v26 = vmul.f32 %v820_v9, %v811_v32  ;;  %v846_v52 = vsel %vm845_vm15, %v1908_v16, %v1906_v0 }
 0x43a   : > { %v735_v18 = vsel %vm728_vm9, %v732_v17, %v734_v61  ;;  %v736_v19 = vsel %vm728_vm9, %v734_v61, %v732_v17  ;;  %v859_v58 = vstv %s1977_s24 }
 0x43b   : > { %v720_v24 = vsel %vm714_vm13, %v710_v60, 0.0  ;;  %v743_v4 = vmul.f32 %v742_v41, %v736_v19  ;;  %v744_v25 = vmul.f32 %v742_v41, %v735_v18  ;;  %v723_v38 = vadd.f32 %v711_v63, %v688_v29 }
 0x43c   : > { %v722_v37 = vadd.f32 %v720_v24, %v687_v28  ;;  %v812_v41 = vsel %vm810_vm12, %v1893_v6, %v1897_v15  ;;  %v865_v60 = vadd.s32 3, %v650_v49  ;;  %v856_v19 = vmul.f32 %v855_v27, %v846_v52 }
 0x43d   : > { %v745_v5 = vadd.f32 %v743_v4, %v739_v54  ;;  %v746_v34 = vadd.f32 %v744_v25, %v740_v8  ;;  %v781_v35 = vpop.permute.xlu1 %780  ;;  %v779_v36 = vpop.permute.xlu0 %778  ;;  %v822_v15 = vmul.f32 %v820_v9, %v812_v41 }
 0x43e   : > { %v782_v20 = vsel %vm775_vm10, %v779_v36, %v781_v35  ;;  %v783_v22 = vsel %vm775_vm10, %v781_v35, %v779_v36  ;;  %vm869_vm2 = vcmp.lt.s32.totalorder %v865_v60, 256 }
 0x43f   : > { %v755_v23 = vsel %vm749_vm14, %v745_v5, 0.0  ;;  %v790_v39 = vmul.f32 %v789_v53, %v782_v20  ;;  %v791_v40 = vmul.f32 %v789_v53, %v783_v22  ;;  %v758_v43 = vadd.f32 %v746_v34, %v723_v38 }
 0x440   : > { %v757_v42 = vadd.f32 %v755_v23, %v722_v37 }
 0x441   : > { %v792_v45 = vadd.f32 %v790_v39, %v786_v33  ;;  %v793_v46 = vadd.f32 %v791_v40, %v787_v12  ;;  %v816_v47 = vpop.permute.xlu1 %815  ;;  %v814_v48 = vpop.permute.xlu0 %813  ;;  %v770_v57 = vadd.f32 %v1871_v55, %v758_v43 }
 0x442   : > { %v769_v50 = vadd.f32 %v1873_v56, %v757_v42  ;;  %v817_v51 = vsel %vm810_vm12, %v814_v48, %v816_v47  ;;  %v818_v6 = vsel %vm810_vm12, %v816_v47, %v814_v48  ;;  %v847_v56 = vsel %vm845_vm15, %v1906_v0, %v1908_v16 }
 0x443   : > { %v825_v53 = vmul.f32 %v824_v44, %v817_v51  ;;  %v826_v54 = vmul.f32 %v824_v44, %v818_v6  ;;  %v803_v61 = vsel %vm799_vm0, %v793_v46, 0.0  ;;  %v857_v0 = vmul.f32 %v855_v27, %v847_v56 }
 0x444   : > { %v804_v9 = vadd.f32 %v792_v45, %v769_v50  ;;  %v805_v4 = vadd.f32 %v803_v61, %v770_v57 }
 0x445   : > { %v827_v17 = vadd.f32 %v825_v53, %v821_v26  ;;  %v828_v62 = vadd.f32 %v826_v54, %v822_v15  ;;  %v851_v63 = vpop.permute.xlu1 %850  ;;  %v849_v18 = vpop.permute.xlu0 %848 }
 0x446   : > { %v852_v8 = vsel %vm845_vm15, %v849_v18, %v851_v63  ;;  %v853_v24 = vsel %vm845_vm15, %v851_v63, %v849_v18 }
 0x447   : > { %v838_v55 = vsel %vm834_vm1, %v828_v62, 0.0  ;;  %v860_v16 = vmul.f32 %v859_v58, %v852_v8  ;;  %v861_v49 = vmul.f32 %v859_v58, %v853_v24  ;;  %v839_v25 = vadd.f32 %v827_v17, %v804_v9 }
 0x448   : > { %v840_v30 = vadd.f32 %v838_v55, %v805_v4 }
 0x449   : > { %v862_v28 = vadd.f32 %v860_v16, %v856_v19  ;;  %v863_v29 = vadd.f32 %v861_v49, %v857_v0 }
 0x44b   : > { %v873_v33 = vsel %vm869_vm2, %v863_v29, 0.0  ;;  %v874_v12 = vadd.f32 %v862_v28, %v839_v25 }
 0x44c   : > { %v875_v5 = vadd.f32 %v873_v33, %v840_v30 }
 0x44d   : > { %v1085_v34 = vmul.f32 -1.442695, %v874_v12 }
 0x44e   : > { %v1086_v21 = vmul.f32 -1.442695, %v875_v5 }
 0x44f   : > { %1239 = vpow2.f32 %v1085_v34 }
 0x450   : > { %1241 = vpow2.f32 %v1086_v21 }
 0x459   : > { %v1240_v27 = vpop.eup %1239 }
 0x45a   : > { %v1242_v31 = vpop.eup %1241  ;;  %v882_v35 = vadd.f32 1.0, %v1240_v27 }
 0x45b   : > { %v883_v36 = vadd.f32 1.0, %v1242_v31 }
 0x45c   : > { %1243 = vrcp.f32 %v882_v35 }
 0x45d   : > { %1245 = vrcp.f32 %v883_v36 }
 0x466   : > { %v1244_v37 = vpop.eup %1243 }
 0x467   : > { %v1246_v38 = vpop.eup %1245  ;;  %v891_v20 = vrot.slane %v1244_v37, %v1828_v59 }
 0x468   : > { %v895_v22 = vrot.slane %v1246_v38, %v1828_v59 }
 0x469   : > { %v896_v32 = vmul.f32 %v891_v20, %v1838_v10  ;;  %v898_v23 = vmul.f32 %v891_v20, %v1832_v3  ;;  %v900_v39 = vmul.f32 %v891_v20, %v1844_v13  ;;  %v902_v40 = vmul.f32 %v891_v20, %v1856_v1 }
 0x46a   : > { %v897_v59 = vmul.f32 %v895_v22, %v1841_v11  ;;  %v899_v10 = vmul.f32 %v895_v22, %v1835_v7  ;;  %v901_v3 = vmul.f32 %v895_v22, %v1847_v14  ;;  %v903_v13 = vmul.f32 %v895_v22, %v1859_v2 }
 0x46b   : > { %904 = vst [vmem:[%s361_s20] sm:$0xff] %v896_v32  ;;  %906 = vst [vmem:[%s361_s20 + $0x10] sm:$0xff] %v898_v23 }
 0x46c   : > { %908 = vst [vmem:[%s361_s20 + $0x20] sm:$0xff] %v900_v39  ;;  %910 = vst [vmem:[%s361_s20 + $0x30] sm:$0xff] %v902_v40 }
 0x46d   : > { %905 = vst [vmem:[%s361_s20 + $0x8] sm:$0xff] %v897_v59  ;;  %907 = vst [vmem:[%s361_s20 + $0x18] sm:$0xff] %v899_v10 }
 0x46e   : > { %909 = vst [vmem:[%s361_s20 + $0x28] sm:$0xff] %v901_v3  ;;  %911 = vst [vmem:[%s361_s20 + $0x38] sm:$0xff] %v903_v13 }
 0x46f   : > { %1415 = shalt.err (!%p1412_p7)
}
 0x470   : > { %s1416_s30 = scalar_lea.hbm %s2035_s8, 1024  ;;  %s1420_s24 = scalar_lea.hbm %s2091_s7, 4096 }
 0x471   : > { %p1417_p5 = scmp.ne.s32.totalorder %s2035_s8, %s1416_s30  ;;  %p1421_p6 = scmp.lt.u32.totalorder %s2035_s8, %s2091_s7 }
 0x472   : > { %p1422_p11 = scmp.lt.u32.totalorder %s1420_s24, %s1416_s30  ;;  %p1424_p12 = scmp.lt.u32.totalorder %s1416_s30, %s2035_s8 }
 0x473   : > { %p1418_p2 = pnand %p1417_p5, %p2110_p0 }
 0x474   : > { %p1423_p13 = por %p1422_p11, %p1421_p6 }
 0x475   : > { %p1419_p1 = pneg %p1418_p2 }
 0x476   : > { %p1425_p3 = por %p1424_p12, %p1423_p13 }
 0x478   : > { %p1426_p4 = pnand %p1425_p3, %p1419_p1 }
 0x47a   : > { %1429 = shalt.err (!%p1426_p4)
}
 0x47b   : > { %s1502_s21 = smov 256   ;;  %s1503_s11 = smov 16  }
 0x47c   : > { %1145 = dma.vmem_to_hbm [thread:$0]  (%p2110_p0), %s2037_s13, 1024, %s2035_s8, %s913_s19, %s1502_s21, %s1502_s21, %s1503_s11  }
 0x47d PF: > { %p1182_p8 = scmp.ge.s32.totalorder %s1480_s29, 2  ;;  %s941_s9 = sand.u32 1, %s1468_s26  }
 0x47e   : > { %p2111_p9 = scmp.ne.s32.totalorder %s2101_s17, 0  ;;  %s942_s15 = scalar_lea.sflag [#allocation5], %s941_s9 }
 0x480   : > { %p1168_p10 = pnand %p1182_p8, %p2111_p9 }
 0x482   : > { %1463 = dma.done.wait (!%p1168_p10), %s942_s15, 1024  }
 0x483   : > { %1465 = vsyncadd (!%p1168_p10), %s942_s15, 4294966272  ;;  %p24_p7 = scmp.ge.s32.totalorder %s1703_s12, 6   ;;  %s2112_s26 = smov %s1472_s27 }
 0x484   : > { %s2113_s27 = smov %s1476_s28  ;;  %s2114_s28 = smov %s1715_s14 }
 0x485   : > { %s2115_s29 = smov %s1703_s12  ;;  %26 = sbr.rel (!%p24_p7) target bundleno = 10 (0xa), region = 114 }
 0x48c   :  { %947 = vsyncpa [#allocation4], 1 }
 0x48d   :  { %949 = vsyncpa [#allocation4 + $0x1], 1 }
 0x48e   :  { %950 = vsyncpa [#allocation8], 1 }
 0x48f   :  { %951 = vsyncpa [#allocation11], 1 }
 0x490   :  { %952 = vsyncpa [#allocation5], 1 }
 0x491   :  { %954 = vsyncpa [#allocation5 + $0x1], 1 }
 0x492   :  { %955 = vsyncpa [#allocation6], 1 }
 0x493   :  { %957 = vsyncpa [#allocation6 + $0x1], 1 }

</bundles_post_ra>
